<compile_context>
chip_gen: v7x
topology: tpu7x:2x2x1
jax: 0.10.0
libtpu: 0.0.40
codegen_flags: <defaults>
</compile_context>

<pallas_src>
import jax
import jax.numpy as jnp
from jax.experimental import pallas as pl
from jax.experimental.pallas import tpu as pltpu

# ----------------------------- problem sizes -------------------------------
OBS = 8      # obs_size
H   = 32     # hidden_size
A   = 4      # action_dim
B   = 256    # batch of observations processed per call
BB  = 128    # batch block per grid step  -> grid = (B // BB,)


# ------------------------------- kernel ------------------------------------
def sac_policy_kernel(x_ref, w1_ref, w2h_ref, b_ref, out_ref):
    x = x_ref[...]                                        # (BB, OBS)
    w2h = w2h_ref[...]                                    # (H, H + 2A)
    b = b_ref[...]                                        # (1, 2H + 2A)
    b1, b2, bh = b[:, :H], b[:, H:2 * H], b[:, 2 * H:]

    # net: Linear -> ReLU -> Linear -> ReLU
    h = jnp.dot(x, w1_ref[...], preferred_element_type=jnp.float32) + b1
    h = jnp.maximum(h, 0.0)
    h = jnp.dot(h, w2h[:, :H], preferred_element_type=jnp.float32) + b2
    h = jnp.maximum(h, 0.0)

    # fused mu/std heads: one (H, 2A) matmul
    y = jnp.dot(h, w2h[:, H:], preferred_element_type=jnp.float32) + bh  # (BB, 2A)

    # first A lanes -> tanh(loc); last A lanes -> softplus(std) + 0.001
    lane = jax.lax.broadcasted_iota(jnp.int32, y.shape, 1)
    softplus = jnp.maximum(y, 0.0) + jnp.log1p(jnp.exp(-jnp.abs(y)))
    out_ref[...] = jnp.where(lane < A, jnp.tanh(y), softplus + 0.001)


# ------------------------------- wrapper ------------------------------------
@jax.jit
def sac_policy_forward(x, w1, w2h, b):
    out = pl.pallas_call(
        sac_policy_kernel,
        out_shape=jax.ShapeDtypeStruct((B, 2 * A), jnp.float32),
        grid=(B // BB,),
        in_specs=[
            pl.BlockSpec((BB, OBS), lambda i: (i, 0)),          # x: batch-blocked
            pl.BlockSpec((OBS, H), lambda i: (0, 0)),           # w1: VMEM-resident
            pl.BlockSpec((H, H + 2 * A), lambda i: (0, 0)),     # w2 | heads
            pl.BlockSpec((1, 2 * H + 2 * A), lambda i: (0, 0)), # packed biases
        ],
        out_specs=pl.BlockSpec((BB, 2 * A), lambda i: (i, 0)),  # fused lane-dense output
        compiler_params=pltpu.CompilerParams(
            dimension_semantics=("parallel",)),
    )(x, w1, w2h, b)
    return out[:, :A], out[:, A:]                               # loc, scale


# --------------------------- parameters -------------------------------------
def init_params(key):
    ks = jax.random.split(key, 8)
    s = 0.1

    def lin(kw, kb, fan_in, fan_out):
        # stored pre-transposed: y = x @ W + b   (W: (fan_in, fan_out))
        w = s * jax.random.normal(kw, (fan_in, fan_out), jnp.float32)
        b = s * jax.random.normal(kb, (1, fan_out), jnp.float32)
        return w, b

    p = {}
    p["w1"], p["b1"] = lin(ks[0], ks[1], OBS, H)
    p["w2"], p["b2"] = lin(ks[2], ks[3], H, H)
    p["w_mu"], p["b_mu"] = lin(ks[4], ks[5], H, A)
    p["w_std"], p["b_std"] = lin(ks[6], ks[7], H, A)
    return p


def pack_params(p):
    # pack once (outside the kernel / jit): 3 slabs
    w1 = p["w1"]
    w2h = jnp.concatenate([p["w2"], p["w_mu"], p["w_std"]], axis=1)      # (H, H+2A)
    b = jnp.concatenate([p["b1"], p["b2"], p["b_mu"], p["b_std"]], axis=1)  # (1, 2H+2A)
    return w1, w2h, b


# ----------------------- pure-JAX reference (check) --------------------------
def reference_forward(x, p):
    h = jax.nn.relu(x @ p["w1"] + p["b1"])
    h = jax.nn.relu(h @ p["w2"] + p["b2"])
    loc = jnp.tanh(h @ p["w_mu"] + p["b_mu"])
    scale = jax.nn.softplus(h @ p["w_std"] + p["b_std"]) + 0.001
    return loc, scale


# ---------------------------------- main -------------------------------------
if __name__ == "__main__":
    key = jax.random.PRNGKey(0)
    kx, kp = jax.random.split(key)

    x = jax.random.normal(kx, (B, OBS), jnp.float32)
    params = init_params(kp)
    w1, w2h, b = pack_params(params)

    loc, scale = sac_policy_forward(x, w1, w2h, b)
    jax.block_until_ready((loc, scale))

    ref_loc, ref_scale = reference_forward(x, params)
    assert jnp.allclose(loc, ref_loc, atol=1e-5, rtol=1e-5), "loc mismatch"
    assert jnp.allclose(scale, ref_scale, atol=1e-5, rtol=1e-5), "scale mismatch"
    assert bool(jnp.all(scale > 0.0)), "scale must be positive"

    print("KERNEL_OK")
</pallas_src>

<mosaic_0001>
module attributes {stable_mosaic.version = 11 : i64} {
  func.func @sac_policy_kernel(%arg0: i32, %arg1: memref<128x8xf32, #tpu.memory_space<vmem>>, %arg2: memref<8x32xf32, #tpu.memory_space<vmem>>, %arg3: memref<32x40xf32, #tpu.memory_space<vmem>>, %arg4: memref<1x72xf32, #tpu.memory_space<vmem>>, %arg5: memref<128x8xf32, #tpu.memory_space<vmem>>) attributes {dimension_semantics = [#tpu.dimension_semantics<parallel>], iteration_bounds = array<i64: 2>, scalar_prefetch = 0 : i64, scratch_operands = 0 : i64, tpu.core_type = #tpu.core_type<tc>, window_params = [{transform_indices = @transform_0, window_bounds = array<i64: 128, 8>}, {pipeline_mode = #tpu.pipeline_mode<synchronous>, transform_indices = @transform_1, window_bounds = array<i64: 8, 32>}, {pipeline_mode = #tpu.pipeline_mode<synchronous>, transform_indices = @transform_2, window_bounds = array<i64: 32, 40>}, {pipeline_mode = #tpu.pipeline_mode<synchronous>, transform_indices = @transform_3, window_bounds = array<i64: 1, 72>}, {transform_indices = @transform_4, window_bounds = array<i64: 128, 8>}]} {
    %c0 = arith.constant 0 : index
    %c0_0 = arith.constant 0 : index
    %0 = vector.load %arg1[%c0, %c0_0] : memref<128x8xf32, #tpu.memory_space<vmem>>, vector<128x8xf32>
    %c0_1 = arith.constant 0 : index
    %c0_2 = arith.constant 0 : index
    %1 = vector.load %arg3[%c0_1, %c0_2] : memref<32x40xf32, #tpu.memory_space<vmem>>, vector<32x40xf32>
    %c0_3 = arith.constant 0 : index
    %c0_4 = arith.constant 0 : index
    %2 = vector.load %arg4[%c0_3, %c0_4] : memref<1x72xf32, #tpu.memory_space<vmem>>, vector<1x72xf32>
    %3 = vector.extract_strided_slice %2 {offsets = [0, 0], sizes = [1, 32], strides = [1, 1]} : vector<1x72xf32> to vector<1x32xf32>
    %4 = vector.extract_strided_slice %2 {offsets = [0, 32], sizes = [1, 32], strides = [1, 1]} : vector<1x72xf32> to vector<1x32xf32>
    %5 = vector.extract_strided_slice %2 {offsets = [0, 64], sizes = [1, 8], strides = [1, 1]} : vector<1x72xf32> to vector<1x8xf32>
    %c0_5 = arith.constant 0 : index
    %c0_6 = arith.constant 0 : index
    %6 = vector.load %arg2[%c0_5, %c0_6] : memref<8x32xf32, #tpu.memory_space<vmem>>, vector<8x32xf32>
    %cst = arith.constant dense<0.000000e+00> : vector<128x32xf32>
    %7 = tpu.matmul %0, %6, %cst {dimension_numbers = #tpu.dot_dimension_numbers<[1], [0], [0], [1], [0, 0, 1, 1], [], []>} : vector<128x8xf32>, vector<8x32xf32>, vector<128x32xf32> -> vector<128x32xf32>
    %8 = vector.broadcast %3 : vector<1x32xf32> to vector<128x32xf32>
    %9 = arith.addf %7, %8 : vector<128x32xf32>
    %cst_7 = arith.constant 0.000000e+00 : f32
    %10 = vector.broadcast %cst_7 : f32 to vector<128x32xf32>
    %11 = arith.maximumf %9, %10 : vector<128x32xf32>
    %12 = vector.extract_strided_slice %1 {offsets = [0, 0], sizes = [32, 32], strides = [1, 1]} : vector<32x40xf32> to vector<32x32xf32>
    %cst_8 = arith.constant dense<0.000000e+00> : vector<128x32xf32>
    %13 = tpu.matmul %11, %12, %cst_8 {dimension_numbers = #tpu.dot_dimension_numbers<[1], [0], [0], [1], [0, 0, 1, 1], [], []>} : vector<128x32xf32>, vector<32x32xf32>, vector<128x32xf32> -> vector<128x32xf32>
    %14 = vector.broadcast %4 : vector<1x32xf32> to vector<128x32xf32>
    %15 = arith.addf %13, %14 : vector<128x32xf32>
    %cst_9 = arith.constant 0.000000e+00 : f32
    %16 = vector.broadcast %cst_9 : f32 to vector<128x32xf32>
    %17 = arith.maximumf %15, %16 : vector<128x32xf32>
    %18 = vector.extract_strided_slice %1 {offsets = [0, 32], sizes = [32, 8], strides = [1, 1]} : vector<32x40xf32> to vector<32x8xf32>
    %cst_10 = arith.constant dense<0.000000e+00> : vector<128x8xf32>
    %19 = tpu.matmul %17, %18, %cst_10 {dimension_numbers = #tpu.dot_dimension_numbers<[1], [0], [0], [1], [0, 0, 1, 1], [], []>} : vector<128x32xf32>, vector<32x8xf32>, vector<128x8xf32> -> vector<128x8xf32>
    %20 = vector.broadcast %5 : vector<1x8xf32> to vector<128x8xf32>
    %21 = arith.addf %19, %20 : vector<128x8xf32>
    %22 = tpu.iota {dimensions = array<i32: 1>} : vector<128x8xi32>
    %cst_11 = arith.constant 0.000000e+00 : f32
    %23 = vector.broadcast %cst_11 : f32 to vector<128x8xf32>
    %24 = arith.maximumf %21, %23 : vector<128x8xf32>
    %25 = math.absf %21 : vector<128x8xf32>
    %cst_12 = arith.constant 0.000000e+00 : f32
    %26 = vector.broadcast %cst_12 : f32 to vector<128x8xf32>
    %27 = arith.subf %26, %25 : vector<128x8xf32>
    %28 = math.exp %27 : vector<128x8xf32>
    %29 = math.log1p %28 : vector<128x8xf32>
    %30 = arith.addf %24, %29 : vector<128x8xf32>
    %c4_i32 = arith.constant 4 : i32
    %31 = vector.broadcast %c4_i32 : i32 to vector<128x8xi32>
    %32 = arith.cmpi slt, %22, %31 : vector<128x8xi32>
    %33 = math.tanh %21 : vector<128x8xf32>
    %cst_13 = arith.constant 1.000000e-03 : f32
    %34 = vector.broadcast %cst_13 : f32 to vector<128x8xf32>
    %35 = arith.addf %30, %34 : vector<128x8xf32>
    %36 = arith.select %32, %33, %35 : vector<128x8xi1>, vector<128x8xf32>
    %c0_14 = arith.constant 0 : index
    %c0_15 = arith.constant 0 : index
    %37 = vector.load %arg5[%c0_14, %c0_15] : memref<128x8xf32, #tpu.memory_space<vmem>>, vector<128x8xf32>
    tpu.vector_store %arg5[%c0_14, %c0_15], %36 {strides = array<i32>} : memref<128x8xf32, #tpu.memory_space<vmem>>, vector<128x8xf32>,
    return
  }
  func.func @transform_0(%arg0: i32) -> (i32, i32) {
    %c0_i32 = arith.constant 0 : i32
    %c0_i32_0 = arith.constant 0 : i32
    return %arg0, %c0_i32 : i32, i32
  }
  func.func @transform_1(%arg0: i32) -> (i32, i32) {
    %c0_i32 = arith.constant 0 : i32
    %c0_i32_0 = arith.constant 0 : i32
    %c0_i32_1 = arith.constant 0 : i32
    return %c0_i32, %c0_i32_0 : i32, i32
  }
  func.func @transform_2(%arg0: i32) -> (i32, i32) {
    %c0_i32 = arith.constant 0 : i32
    %c0_i32_0 = arith.constant 0 : i32
    %c0_i32_1 = arith.constant 0 : i32
    return %c0_i32, %c0_i32_0 : i32, i32
  }
  func.func @transform_3(%arg0: i32) -> (i32, i32) {
    %c0_i32 = arith.constant 0 : i32
    %c0_i32_0 = arith.constant 0 : i32
    %c0_i32_1 = arith.constant 0 : i32
    return %c0_i32, %c0_i32_0 : i32, i32
  }
  func.func @transform_4(%arg0: i32) -> (i32, i32) {
    %c0_i32 = arith.constant 0 : i32
    %c0_i32_0 = arith.constant 0 : i32
    return %arg0, %c0_i32 : i32, i32
  }
}

</mosaic_0001>

<bundles_post_ra>
// kernel: sac_policy_forward.1
= control target key start
LH: loop header
LB: loop body
LE: loop exit
PB: predicated region body
PF: predicated region fallthrough
CT: control target
= control target key end

     0   :  { %s1603_s15 = smov 0   ;;  %s2038_s0 = inlined_call_operand.vmem [shape: f32[256,8], index: 0, kind: input, shape index: {}]   ;;  %s2039_s1 = inlined_call_operand.vmem [shape: f32[8,32], index: 1, kind: input, shape index: {}]   ;;  %s2040_s2 = inlined_call_operand.vmem [shape: f32[32,40], index: 2, kind: input, shape index: {}]   ;;  %s2041_s3 = inlined_call_operand.vmem [shape: f32[1,72], index: 3, kind: input, shape index: {}]   ;;  %s2042_s4 = inlined_call_operand.vmem [shape: f32[256,8], index: 4, kind: output, shape index: {}]  }
   0x1 LB: > { %s1227_s16 = sadd.s32 4294967295, %s1574_s15   ;;  %p1231_p0 = scmp.ge.s32.totalorder %s1574_s15, 1  ;;  %s1574_s15 = sphi %s1603_s15, %s14_s15  }
   0x2   : > { %p163_p1 = scmp.lt.s32.totalorder %s1574_s15, 3 }
   0x4   : > { %p164_p2 = pnand %p1231_p0, %p163_p1 }
   0x5   : > { %v222_v0 = vld [vmem:[%s2039_s1] sm:$0xff] (!%p164_p2)  ;;  %s1232_s19 = sshll.u32 (!%p164_p2), %s1227_s16, 4  ;;  %v218_v2 = vld [vmem:[%s2040_s2 + $0x8] sm:$0xff] (!%p164_p2)  ;;  %vm229_vm0 = vcmask (!%p164_p2), 64512   ;;  %v219_v4 = vld [vmem:[%s2040_s2 + $0x10] sm:$0xff] (!%p164_p2)  ;;  %s1576_s8 = smov (!%p164_p2), 96  }
   0x6   : > { %167 = sbr.rel (%p164_p2) target bundleno = 762 (0x2fa), region = 36  ;;  %v217_v1 = vld [vmem:[%s2040_s2] sm:$0xff] (!%p164_p2)  ;;  %1344 = vmatprep.subr.mxu0 (!%p164_p2), %v222_v0  ;;  %p190_p3 = scmp.lt.s32.totalorder (!%p164_p2), %s1232_s19, 31  ;;  %1450 = vmatprep.subr.mxu1 (!%p164_p2), %v222_v0  ;;  %v220_v5 = vld [vmem:[%s2040_s2 + $0x18] sm:$0xff] (!%p164_p2)  ;;  %vm442_vm1 = vcmask (!%p164_p2), 261120  }
   0x7   : > { %v1434_v3 = vpack.c.bf16 (!%p164_p2), %v218_v2, %v217_v1  ;;  %1345 = vmatpush3.msra.mxu0 (!%p164_p2), %v222_v0  ;;  %1451 = vmatpush3.msra.mxu1 (!%p164_p2), %v222_v0  ;;  %v1438_v10 = vpack.c.bf16 (!%p164_p2), %v220_v5, %v219_v4  ;;  %v1671_v23 = vld [vmem:[%s2041_s3] ss:$0 sm:$0xff] (!%p164_p2)  ;;  %v1462_v24 = vpack.i.bf16 (!%p164_p2), %v218_v2, %v217_v1  ;;  %s1577_s9 = smov (!%p164_p2), 64  }
   0x8   : > { %439 = vrot.lane.b32.xlu1 (!%p164_p2), %v1671_v23, %s1576_s8  ;;  %v1467_v25 = vpack.i.bf16 (!%p164_p2), %v220_v5, %v219_v4 }
   0x9   : > { %1435 = vmatprep.subr.bf16.mxu1 (!%p164_p2), %v1434_v3  ;;  %1463 = vrot.lane.b32.xlu0 (!%p164_p2), %v1462_v24, %s1576_s8 }
   0xc   : > { %668 = vrot.lane.b32.xlu1 (!%p164_p2), %v1671_v23, %s1577_s9 }
   0xd   : > { %s2058_s19 = smov (!%p190_p3, %s1232_s19), 31  ;;  %1468 = vrot.lane.b32.xlu0 %v1467_v25, %s1576_s8 }
   0xe   : > { %s1233_s24 = sshll.u32 %s2058_s19, 3 }
   0xf   : > { %s1628_s27 = scalar_lea.vmem %s2038_s0, %s1233_s24  ;;  %s1862_s12 = scalar_lea.vmem %s2042_s4, %s1233_s24 }
  0x10   : > { %v201_v6 = vld [vmem:[%s1628_s27] sm:$0xff]  ;;  %v202_v7 = vld [vmem:[%s1628_s27 + $0x8] sm:$0xff]  ;;  %v203_v8 = vld [vmem:[%s1628_s27 + $0x10] sm:$0xff] }
  0x11   : > { %1346 = vmatprep.mubr.msk.f32.mxu0 %vm229_vm0, %v201_v6  ;;  %v209_v9 = vld [vmem:[%s1628_s27 + $0x40] sm:$0xff]  ;;  %v204_v11 = vld [vmem:[%s1628_s27 + $0x18] sm:$0xff]  ;;  %v210_v12 = vld [vmem:[%s1628_s27 + $0x48] sm:$0xff] }
  0x12   : > { %1347 = vmatmul.mubr.msk.f32.vlgmr.msra.gmra.mrb[0].mxu0 %vm229_vm0, %v202_v7  ;;  %1358 = vmatprep.mubr.msk.f32.mxu1 %vm229_vm0, %v209_v9  ;;  %v211_v13 = vld [vmem:[%s1628_s27 + $0x50] sm:$0xff]  ;;  %v205_v14 = vld [vmem:[%s1628_s27 + $0x20] sm:$0xff]  ;;  %v212_v15 = vld [vmem:[%s1628_s27 + $0x58] sm:$0xff] }
  0x13   : > { %1349 = vmatprep.mubr.msk.f32.mxu0 %vm229_vm0, %v203_v8  ;;  %1359 = vmatmul.mubr.msk.f32.vlgmr.msra.gmra.mrb[0].mxu1 %vm229_vm0, %v210_v12  ;;  %v213_v16 = vld [vmem:[%s1628_s27 + $0x60] sm:$0xff]  ;;  %v206_v17 = vld [vmem:[%s1628_s27 + $0x28] sm:$0xff]  ;;  %v207_v18 = vld [vmem:[%s1628_s27 + $0x30] sm:$0xff] }
  0x14   : > { %1361 = vmatprep.mubr.msk.f32.mxu1 %vm229_vm0, %v211_v13  ;;  %1437 = vmatpush3.bf16.msra.mxu1 %v1434_v3  ;;  %v214_v19 = vld [vmem:[%s1628_s27 + $0x68] sm:$0xff]  ;;  %v215_v20 = vld [vmem:[%s1628_s27 + $0x70] sm:$0xff]  ;;  %v208_v21 = vld [vmem:[%s1628_s27 + $0x38] sm:$0xff] }
  0x15   : > { %1439 = vmatprep.subr.bf16.mxu1 %v1438_v10  ;;  %v216_v22 = vld [vmem:[%s1628_s27 + $0x78] sm:$0xff] }
  0x16   : > { %1350 = vmatmul.mubr.msk.f32.gmra.mrb[2].mxu0 %vm229_vm0, %v204_v11 }
  0x17   : > { %1352 = vmatprep.mubr.msk.f32.mxu0 %vm229_vm0, %v205_v14  ;;  %1362 = vmatmul.mubr.msk.f32.gmra.mrb[2].mxu1 %vm229_vm0, %v212_v15 }
  0x18   : > { %1364 = vmatprep.mubr.msk.f32.mxu1 %vm229_vm0, %v213_v16  ;;  %1441 = vmatpush3.bf16.msra.mxu1 %v1438_v10 }
  0x1a   : > { %1353 = vmatmul.mubr.msk.f32.gmra.mrb[4].mxu0 %vm229_vm0, %v206_v17 }
  0x1b   : > { %1355 = vmatprep.mubr.msk.f32.mxu0 %vm229_vm0, %v207_v18  ;;  %1365 = vmatmul.mubr.msk.f32.gmra.mrb[4].mxu1 %vm229_vm0, %v214_v19 }
  0x1c   : > { %1367 = vmatprep.mubr.msk.f32.mxu1 %vm229_vm0, %v215_v20 }
  0x1e   : > { %1356 = vmatmul.mubr.msk.f32.gmra.mrb[6].mxu0 %vm229_vm0, %v208_v21 }
  0x1f   : > { %1368 = vmatmul.mubr.msk.f32.gmra.mrb[6].mxu1 %vm229_vm0, %v216_v22 }
  0x7a   : > { %v440_v18 = vpop.permute.xlu1 %439 }
  0x7b   : > { %v1464_v2 = vpop.permute.xlu0 %1463 }
  0x7c   : > { %v1466_v5 = vunpack.i.h.bf16 %v1464_v2  ;;  %v1465_v6 = vunpack.i.l.bf16 %v1464_v2 }
  0x7e   : > { %v1442_v9 = vpack.c.bf16 %v1466_v5, %v1465_v6 }
  0x7f   : > { %v1469_v10 = vpop.permute.xlu0 %1468 }
  0x80   : > { %1443 = vmatprep.subr.bf16.mxu0 %v1442_v9  ;;  %v1471_v12 = vunpack.i.h.bf16 %v1469_v10  ;;  %v1470_v13 = vunpack.i.l.bf16 %v1469_v10 }
  0x81   : > { %1445 = vmatpush3.bf16.msra.mxu0 %v1442_v9 }
  0x82   : > { %v1446_v16 = vpack.c.bf16 %v1471_v12, %v1470_v13 }
  0x84   : > { %1447 = vmatprep.subr.bf16.mxu0 %v1446_v16 }
  0x85   : > { %1449 = vmatpush3.bf16.msra.mxu0 %v1446_v16 }
  0xe5   : > { %v1348_v26 = vpop.f32.mrb[0].mxu0 }
  0xe6   : > { %v350_v27 = vadd.f32 %v1348_v26, %v1671_v23  ;;  %v344_v28 = vpop.f32.mrb[1].mxu0  ;;  %v1360_v30 = vpop.f32.mrb[0].mxu1 }
  0xe7   : > { %v345_v29 = vadd.f32 %v1671_v23, %v344_v28  ;;  %v384_v31 = vpop.f32.mrb[1].mxu1  ;;  %v390_v61 = vadd.f32 %v1360_v30, %v1671_v23 }
  0xe8   : > { %v424_v34 = vmax.f32 %v350_v27, 0.0  ;;  %v385_v50 = vadd.f32 %v1671_v23, %v384_v31 }
  0xe9   : > { %v423_v32 = vmax.f32 %v345_v29, 0.0  ;;  %v1351_v33 = vpop.f32.mrb[2].mxu0  ;;  %v432_v0 = vmax.f32 %v390_v61, 0.0 }
  0xea   : > { %v360_v35 = vadd.f32 %v1351_v33, %v1671_v23  ;;  %v354_v36 = vpop.f32.mrb[3].mxu0  ;;  %v1363_v38 = vpop.f32.mrb[2].mxu1  ;;  %v431_v58 = vmax.f32 %v385_v50, 0.0 }
  0xeb   : > { %v355_v37 = vadd.f32 %v1671_v23, %v354_v36  ;;  %1378 = vmatprep.mubr.msk.f32.mxu1 %vm442_vm1, %v423_v32  ;;  %v394_v39 = vpop.f32.mrb[3].mxu1  ;;  %v400_v1 = vadd.f32 %v1363_v38, %v1671_v23 }
  0xec   : > { %1379 = vmatmul.mubr.msk.f32.vlgmr.msra.gmra.mrb[8].mxu1 %vm442_vm1, %v424_v34  ;;  %v426_v42 = vmax.f32 %v360_v35, 0.0  ;;  %v395_v59 = vadd.f32 %v1671_v23, %v394_v39 }
  0xed   : > { %v425_v40 = vmax.f32 %v355_v37, 0.0  ;;  %v1354_v41 = vpop.f32.mrb[4].mxu0  ;;  %v434_v7 = vmax.f32 %v400_v1, 0.0 }
  0xee   : > { %v370_v43 = vadd.f32 %v1354_v41, %v1671_v23  ;;  %v364_v44 = vpop.f32.mrb[5].mxu0  ;;  %v1366_v46 = vpop.f32.mrb[4].mxu1  ;;  %v433_v62 = vmax.f32 %v395_v59, 0.0 }
  0xef   : > { %v365_v45 = vadd.f32 %v1671_v23, %v364_v44  ;;  %1381 = vmatprep.mubr.msk.f32.mxu1 %vm442_vm1, %v425_v40  ;;  %v404_v47 = vpop.f32.mrb[5].mxu1  ;;  %v410_v8 = vadd.f32 %v1366_v46, %v1671_v23 }
  0xf0   : > { %1382 = vmatmul.mubr.msk.f32.gmra.mrb[10].mxu1 %vm442_vm1, %v426_v42  ;;  %v428_v51 = vmax.f32 %v370_v43, 0.0  ;;  %v405_v63 = vadd.f32 %v1671_v23, %v404_v47 }
  0xf1   : > { %v427_v48 = vmax.f32 %v365_v45, 0.0  ;;  %v1357_v49 = vpop.f32.mrb[6].mxu0  ;;  %v436_v14 = vmax.f32 %v410_v8, 0.0 }
  0xf2   : > { %v380_v52 = vadd.f32 %v1357_v49, %v1671_v23  ;;  %v374_v53 = vpop.f32.mrb[7].mxu0  ;;  %v1369_v55 = vpop.f32.mrb[6].mxu1  ;;  %v435_v3 = vmax.f32 %v405_v63, 0.0 }
  0xf3   : > { %v375_v54 = vadd.f32 %v1671_v23, %v374_v53  ;;  %1384 = vmatprep.mubr.msk.f32.mxu1 %vm442_vm1, %v427_v48  ;;  %v414_v56 = vpop.f32.mrb[7].mxu1  ;;  %v420_v15 = vadd.f32 %v1369_v55, %v1671_v23 }
  0xf4   : > { %1385 = vmatmul.mubr.msk.f32.gmra.mrb[12].mxu1 %vm442_vm1, %v428_v51  ;;  %v430_v60 = vmax.f32 %v380_v52, 0.0  ;;  %v415_v4 = vadd.f32 %v1671_v23, %v414_v56 }
  0xf5   : > { %v429_v57 = vmax.f32 %v375_v54, 0.0  ;;  %v438_v17 = vmax.f32 %v420_v15, 0.0 }
  0xf6   : > { %v437_v11 = vmax.f32 %v415_v4, 0.0 }
  0xf7   : > { %1387 = vmatprep.mubr.msk.f32.mxu1 %vm442_vm1, %v429_v57 }
  0xf8   : > { %1388 = vmatmul.mubr.msk.f32.gmra.mrb[14].mxu1 %vm442_vm1, %v430_v60 }
  0xf9   : > { %1390 = vmatprep.mubr.msk.f32.mxu1 %vm442_vm1, %v431_v58 }
  0xfc   : > { %1391 = vmatmul.mubr.msk.f32.gmra.mrb[16].mxu1 %vm442_vm1, %v432_v0 }
  0xfd   : > { %1393 = vmatprep.mubr.msk.f32.mxu1 %vm442_vm1, %v433_v62 }
 0x100   : > { %1394 = vmatmul.mubr.msk.f32.gmra.mrb[18].mxu1 %vm442_vm1, %v434_v7 }
 0x101   : > { %1396 = vmatprep.mubr.msk.f32.mxu1 %vm442_vm1, %v435_v3  ;;  %v1723_v3 = vpop.permute.xlu1 %668 }
 0x104   : > { %1397 = vmatmul.mubr.msk.f32.gmra.mrb[20].mxu1 %vm442_vm1, %v436_v14 }
 0x105   : > { %1399 = vmatprep.mubr.msk.f32.mxu1 %vm442_vm1, %v437_v11 }
 0x108   : > { %1400 = vmatmul.mubr.msk.f32.gmra.mrb[22].mxu1 %vm442_vm1, %v438_v17 }
 0x1bf   : > { %v1380_v19 = vpop.f32.mrb[8].mxu1 }
 0x1c0   : > { %v563_v20 = vadd.f32 %v1380_v19, %v440_v18  ;;  %v557_v21 = vpop.f32.mrb[9].mxu1 }
 0x1c1   : > { %v558_v22 = vadd.f32 %v557_v21, %v440_v18 }
 0x1c2   : > { %v637_v26 = vmax.f32 %v563_v20, 0.0 }
 0x1c3   : > { %v636_v24 = vmax.f32 %v558_v22, 0.0  ;;  %v1383_v25 = vpop.f32.mrb[10].mxu1 }
 0x1c4   : > { %v573_v27 = vadd.f32 %v1383_v25, %v440_v18  ;;  %v567_v28 = vpop.f32.mrb[11].mxu1 }
 0x1c5   : > { %v568_v29 = vadd.f32 %v567_v28, %v440_v18  ;;  %1410 = vmatprep.mubr.msk.f32.mxu0 %vm442_vm1, %v636_v24 }
 0x1c6   : > { %1411 = vmatmul.mubr.msk.f32.vlgmr.msra.gmra.mrb[8].mxu0 %vm442_vm1, %v637_v26  ;;  %v639_v32 = vmax.f32 %v573_v27, 0.0 }
 0x1c7   : > { %v638_v30 = vmax.f32 %v568_v29, 0.0  ;;  %v1386_v31 = vpop.f32.mrb[12].mxu1 }
 0x1c8   : > { %v583_v33 = vadd.f32 %v1386_v31, %v440_v18  ;;  %v577_v23 = vpop.f32.mrb[13].mxu1 }
 0x1c9   : > { %v578_v34 = vadd.f32 %v577_v23, %v440_v18  ;;  %1413 = vmatprep.mubr.msk.f32.mxu0 %vm442_vm1, %v638_v30 }
 0x1ca   : > { %1414 = vmatmul.mubr.msk.f32.gmra.mrb[10].mxu0 %vm442_vm1, %v639_v32  ;;  %v641_v37 = vmax.f32 %v583_v33, 0.0 }
 0x1cb   : > { %v640_v35 = vmax.f32 %v578_v34, 0.0  ;;  %v1389_v36 = vpop.f32.mrb[14].mxu1  ;;  %v864_v34 = vlaneseq }
 0x1cc   : > { %v593_v38 = vadd.f32 %v1389_v36, %v440_v18  ;;  %v587_v39 = vpop.f32.mrb[15].mxu1 }
 0x1cd   : > { %v588_v40 = vadd.f32 %v587_v39, %v440_v18  ;;  %1416 = vmatprep.mubr.msk.f32.mxu0 %vm442_vm1, %v640_v35 }
 0x1ce   : > { %1417 = vmatmul.mubr.msk.f32.gmra.mrb[12].mxu0 %vm442_vm1, %v641_v37  ;;  %v643_v43 = vmax.f32 %v593_v38, 0.0 }
 0x1cf   : > { %v642_v41 = vmax.f32 %v588_v40, 0.0  ;;  %v1392_v42 = vpop.f32.mrb[16].mxu1 }
 0x1d0   : > { %v603_v44 = vadd.f32 %v1392_v42, %v440_v18  ;;  %v597_v45 = vpop.f32.mrb[17].mxu1 }
 0x1d1   : > { %v598_v46 = vadd.f32 %v597_v45, %v440_v18  ;;  %1419 = vmatprep.mubr.msk.f32.mxu0 %vm442_vm1, %v642_v41 }
 0x1d2   : > { %1420 = vmatmul.mubr.msk.f32.gmra.mrb[14].mxu0 %vm442_vm1, %v643_v43  ;;  %v645_v49 = vmax.f32 %v603_v44, 0.0  ;;  %v1759_v43 = vand.u32 127, %v864_v34 }
 0x1d3   : > { %v644_v47 = vmax.f32 %v598_v46, 0.0  ;;  %v1395_v48 = vpop.f32.mrb[18].mxu1 }
 0x1d4   : > { %v613_v50 = vadd.f32 %v1395_v48, %v440_v18  ;;  %v607_v51 = vpop.f32.mrb[19].mxu1  ;;  %vm1106_vm4 = vcmp.lt.s32.totalorder %v1759_v43, 4 }
 0x1d5   : > { %v608_v52 = vadd.f32 %v607_v51, %v440_v18  ;;  %1422 = vmatprep.mubr.msk.f32.mxu0 %vm442_vm1, %v644_v47 }
 0x1d6   : > { %1423 = vmatmul.mubr.msk.f32.gmra.mrb[16].mxu0 %vm442_vm1, %v645_v49  ;;  %v647_v55 = vmax.f32 %v613_v50, 0.0 }
 0x1d7   : > { %v646_v53 = vmax.f32 %v608_v52, 0.0  ;;  %v1398_v54 = vpop.f32.mrb[20].mxu1 }
 0x1d8   : > { %v623_v56 = vadd.f32 %v1398_v54, %v440_v18  ;;  %v617_v57 = vpop.f32.mrb[21].mxu1 }
 0x1d9   : > { %v618_v58 = vadd.f32 %v617_v57, %v440_v18  ;;  %1425 = vmatprep.mubr.msk.f32.mxu0 %vm442_vm1, %v646_v53 }
 0x1da   : > { %1426 = vmatmul.mubr.msk.f32.gmra.mrb[18].mxu0 %vm442_vm1, %v647_v55  ;;  %v649_v61 = vmax.f32 %v623_v56, 0.0 }
 0x1db   : > { %v648_v59 = vmax.f32 %v618_v58, 0.0  ;;  %v1401_v60 = vpop.f32.mrb[22].mxu1 }
 0x1dc   : > { %v633_v62 = vadd.f32 %v1401_v60, %v440_v18  ;;  %v627_v63 = vpop.f32.mrb[23].mxu1 }
 0x1dd   : > { %v628_v0 = vadd.f32 %v627_v63, %v440_v18  ;;  %1428 = vmatprep.mubr.msk.f32.mxu0 %vm442_vm1, %v648_v59 }
 0x1de   : > { %1429 = vmatmul.mubr.msk.f32.gmra.mrb[20].mxu0 %vm442_vm1, %v649_v61  ;;  %v651_v2 = vmax.f32 %v633_v62, 0.0 }
 0x1df   : > { %v650_v1 = vmax.f32 %v628_v0, 0.0 }
 0x1e1   : > { %1431 = vmatprep.mubr.msk.f32.mxu0 %vm442_vm1, %v650_v1 }
 0x1e2   : > { %1432 = vmatmul.mubr.msk.f32.gmra.mrb[22].mxu0 %vm442_vm1, %v651_v2 }
 0x299   : > { %v1412_v4 = vpop.f32.mrb[8].mxu0 }
 0x29a   : > { %v1726_v5 = vadd.f32 %v1412_v4, %v1723_v3  ;;  %v785_v6 = vpop.f32.mrb[9].mxu0 }
 0x29b   : > { %v1729_v7 = vadd.f32 %v785_v6, %v1723_v3 }
 0x29c   : > { %v883_v8 = vand.u32 2147483647, %v1726_v5  ;;  %v867_v44 = vmax.f32 %v1726_v5, 0.0 }
 0x29d   : > { %v882_v9 = vand.u32 2147483647, %v1729_v7  ;;  %v1415_v10 = vpop.f32.mrb[10].mxu0  ;;  %v866_v47 = vmax.f32 %v1729_v7, 0.0 }
 0x29e   : > { %v899_v11 = vsub.f32 0.0, %v883_v8  ;;  %v1734_v12 = vadd.f32 %v1415_v10, %v1723_v3  ;;  %v795_v13 = vpop.f32.mrb[11].mxu0 }
 0x29f   : > { %v898_v14 = vsub.f32 0.0, %v882_v9  ;;  %v1737_v15 = vadd.f32 %v795_v13, %v1723_v3 }
 0x2a0   : > { %v916_v16 = vmul.f32 1.442695, %v899_v11  ;;  %v885_v17 = vand.u32 2147483647, %v1734_v12  ;;  %v869_v52 = vmax.f32 %v1734_v12, 0.0 }
 0x2a1   : > { %v914_v18 = vmul.f32 1.442695, %v898_v14  ;;  %v884_v19 = vand.u32 2147483647, %v1737_v15  ;;  %v1418_v20 = vpop.f32.mrb[12].mxu0  ;;  %v868_v53 = vmax.f32 %v1737_v15, 0.0 }
 0x2a2   : > { %1472 = vpow2.f32 %v916_v16  ;;  %v901_v21 = vsub.f32 0.0, %v885_v17  ;;  %v1742_v22 = vadd.f32 %v1418_v20, %v1723_v3  ;;  %v805_v24 = vpop.f32.mrb[13].mxu0 }
 0x2a3   : > { %1474 = vpow2.f32 %v914_v18  ;;  %v900_v25 = vsub.f32 0.0, %v884_v19  ;;  %v1745_v26 = vadd.f32 %v805_v24, %v1723_v3 }
 0x2a4   : > { %v920_v27 = vmul.f32 1.442695, %v901_v21  ;;  %v887_v28 = vand.u32 2147483647, %v1742_v22  ;;  %1476 = vtanh.f32 %v1726_v5  ;;  %v871_v60 = vmax.f32 %v1742_v22, 0.0 }
 0x2a5   : > { %v918_v29 = vmul.f32 1.442695, %v900_v25  ;;  %v886_v30 = vand.u32 2147483647, %v1745_v26  ;;  %v1421_v31 = vpop.f32.mrb[14].mxu0  ;;  %v870_v8 = vmax.f32 %v1745_v26, 0.0 }
 0x2a6   : > { %1478 = vpow2.f32 %v920_v27  ;;  %v903_v32 = vsub.f32 0.0, %v887_v28  ;;  %v1751_v33 = vadd.f32 %v1421_v31, %v1723_v3  ;;  %v815_v23 = vpop.f32.mrb[15].mxu0 }
 0x2a7   : > { %1480 = vpow2.f32 %v918_v29  ;;  %v902_v35 = vsub.f32 0.0, %v886_v30  ;;  %v1754_v36 = vadd.f32 %v815_v23, %v1723_v3 }
 0x2a8   : > { %1482 = vtanh.f32 %v1729_v7  ;;  %v924_v37 = vmul.f32 1.442695, %v903_v32  ;;  %v889_v38 = vand.u32 2147483647, %v1751_v33  ;;  %v873_v9 = vmax.f32 %v1751_v33, 0.0 }
 0x2a9   : > { %1484 = vtanh.f32 %v1734_v12  ;;  %v922_v39 = vmul.f32 1.442695, %v902_v35  ;;  %v1424_v40 = vpop.f32.mrb[16].mxu0  ;;  %v888_v45 = vand.u32 2147483647, %v1754_v36 }
 0x2aa   : > { %1486 = vpow2.f32 %v924_v37  ;;  %v905_v41 = vsub.f32 0.0, %v889_v38  ;;  %v825_v42 = vpop.f32.mrb[17].mxu0  ;;  %v1766_v49 = vadd.f32 %v1424_v40, %v1723_v3 }
 0x2ab   : > { %1488 = vpow2.f32 %v922_v39  ;;  %v904_v61 = vsub.f32 0.0, %v888_v45  ;;  %v1778_v2 = vadd.f32 %v825_v42, %v1723_v3 }
 0x2ac   : > { %v1473_v46 = vpop.eup %1472  ;;  %1490 = vtanh.f32 %v1737_v15  ;;  %v928_v48 = vmul.f32 1.442695, %v905_v41  ;;  %v891_v1 = vand.u32 2147483647, %v1766_v49 }
 0x2ad   : > { %v1475_v50 = vpop.eup %1474  ;;  %v955_v51 = vadd.f32 1.0, %v1473_v46  ;;  %1492 = vtanh.f32 %v1742_v22  ;;  %v958_v54 = vmul.f32 -0.5, %v1473_v46  ;;  %v1427_v57 = vpop.f32.mrb[18].mxu0  ;;  %v961_v59 = vand.u32 2147483647, %v1473_v46 }
 0x2ae   : > { %v946_v55 = vadd.f32 1.0, %v1475_v50  ;;  %v949_v56 = vmul.f32 -0.5, %v1475_v50  ;;  %1494 = vpow2.f32 %v928_v48  ;;  %v1771_v58 = vpop.eup %1476  ;;  %v1774_v62 = vpop.f32.mrb[19].mxu0  ;;  %v952_v0 = vand.u32 2147483647, %v1475_v50 }
 0x2af   : > { %1496 = vlog2.f32 %v955_v51  ;;  %v959_v13 = vadd.f32 1.0, %v958_v54  ;;  %vm1794_vm2 = vcmp.lt.f32.partialorder %v961_v59, 0.0004427343  ;;  %v926_v24 = vmul.f32 1.442695, %v904_v61 }
 0x2b0   : > { %v1479_v63 = vpop.eup %1478  ;;  %1498 = vlog2.f32 %v946_v55  ;;  %v950_v14 = vadd.f32 1.0, %v949_v56  ;;  %vm1800_vm3 = vcmp.lt.f32.partialorder %v952_v0, 0.0004427343  ;;  %v907_v28 = vsub.f32 0.0, %v891_v1 }
 0x2b1   : > { %v1780_v4 = vpop.eup %1480  ;;  %v973_v6 = vadd.f32 1.0, %v1479_v63  ;;  %1500 = vtanh.f32 %v1745_v26  ;;  %v1785_v10 = vpop.f32.mrb[20].mxu0  ;;  %v976_v16 = vmul.f32 -0.5, %v1479_v63  ;;  %v979_v21 = vand.u32 2147483647, %v1479_v63 }
 0x2b2   : > { %v1787_v11 = vpop.eup %1482  ;;  %v964_v17 = vadd.f32 1.0, %v1780_v4  ;;  %v1790_v18 = vpop.f32.mrb[21].mxu0  ;;  %v890_v29 = vand.u32 2147483647, %v1778_v2  ;;  %v967_v31 = vmul.f32 -0.5, %v1780_v4  ;;  %v960_v37 = vmul.f32 %v1473_v46, %v959_v13 }
 0x2b3   : > { %v1792_v19 = vpop.eup %1484  ;;  %1502 = vlog2.f32 %v973_v6  ;;  %v970_v32 = vand.u32 2147483647, %v1780_v4  ;;  %v951_v38 = vmul.f32 %v1475_v50, %v950_v14  ;;  %v977_v39 = vadd.f32 1.0, %v976_v16 }
 0x2b4   : > { %v1798_v25 = vpop.eup %1486  ;;  %1504 = vlog2.f32 %v964_v17  ;;  %vm1821_vm5 = vcmp.lt.f32.partialorder %v979_v21, 0.0004427343  ;;  %v906_v51 = vsub.f32 0.0, %v890_v29  ;;  %v932_v50 = vmul.f32 1.442695, %v907_v28 }
 0x2b5   : > { %v1805_v30 = vpop.eup %1488  ;;  %v991_v23 = vadd.f32 1.0, %v1798_v25  ;;  %1506 = vtanh.f32 %v1751_v33  ;;  %v1811_v34 = vpop.f32.mrb[22].mxu0  ;;  %v994_v48 = vmul.f32 -0.5, %v1798_v25  ;;  %v997_v46 = vand.u32 2147483647, %v1798_v25 }
 0x2b6   : > { %v1813_v35 = vpop.eup %1490  ;;  %v982_v40 = vadd.f32 1.0, %v1805_v30  ;;  %v1817_v41 = vpop.f32.mrb[23].mxu0  ;;  %v1830_v55 = vadd.f32 %v1427_v57, %v1723_v3  ;;  %v968_v59 = vadd.f32 1.0, %v967_v31  ;;  %vm1832_vm6 = vcmp.lt.f32.partialorder %v970_v32, 0.0004427343 }
 0x2b7   : > { %v1819_v42 = vpop.eup %1492  ;;  %1508 = vlog2.f32 %v991_v23  ;;  %v985_v0 = vmul.f32 -0.5, %v1805_v30  ;;  %v978_v14 = vmul.f32 %v1479_v63, %v977_v39  ;;  %v930_v16 = vmul.f32 1.442695, %v906_v51 }
 0x2b8   : > { %v1826_v54 = vpop.eup %1494  ;;  %1510 = vlog2.f32 %v982_v40  ;;  %v995_v57 = vadd.f32 1.0, %v994_v48  ;;  %v988_v28 = vand.u32 2147483647, %v1805_v30  ;;  %vm1843_vm7 = vcmp.lt.f32.partialorder %v997_v46, 0.0004427343 }
 0x2b9   : > { %v1497_v56 = vpop.eup %1496  ;;  %v1009_v1 = vadd.f32 1.0, %v1826_v54  ;;  %1512 = vpow2.f32 %v926_v24  ;;  %v893_v63 = vand.u32 2147483647, %v1830_v55  ;;  %v986_v39 = vadd.f32 1.0, %v985_v0 }
 0x2ba   : > { %v1499_v6 = vpop.eup %1498  ;;  %v957_v13 = vmul.f32 0.6931472, %v1497_v56  ;;  %v1012_v40 = vmul.f32 -0.5, %v1826_v54  ;;  %v969_v27 = vmul.f32 %v1780_v4, %v968_v59  ;;  %vm1865_vm8 = vcmp.lt.f32.partialorder %v988_v28, 0.0004427343 }
 0x2bb   : > { %v1838_v17 = vpop.eup %1500  ;;  %v948_v21 = vmul.f32 0.6931472, %v1499_v6  ;;  %1514 = vlog2.f32 %v1009_v1  ;;  %v909_v51 = vsub.f32 0.0, %v893_v63  ;;  %v1015_v61 = vand.u32 2147483647, %v1826_v54 }
 0x2bc   : > { %v963_v29 = vsel %vm1794_vm2, %v960_v37, %v957_v13  ;;  %1516 = vpow2.f32 %v932_v50  ;;  %v996_v50 = vmul.f32 %v1798_v25, %v995_v57  ;;  %v1013_v6 = vadd.f32 1.0, %v1012_v40 }
 0x2bd   : > { %v1503_v24 = vpop.eup %1502  ;;  %v1091_v32 = vadd.f32 %v963_v29, %v867_v44  ;;  %v954_v23 = vsel %vm1800_vm3, %v951_v38, %v948_v21  ;;  %1518 = vpow2.f32 %v930_v16  ;;  %v936_v56 = vmul.f32 1.442695, %v909_v51 }
 0x2be   : > { %v1505_v20 = vpop.eup %1504  ;;  %v1090_v37 = vadd.f32 %v954_v23, %v866_v47  ;;  %v975_v48 = vmul.f32 0.6931472, %v1503_v24  ;;  %v1896_v15 = vadd.f32 %v1774_v62, %v1723_v3  ;;  %v1014_v22 = vmul.f32 %v1826_v54, %v1013_v6 }
 0x2bf   : > { %v1855_v46 = vpop.eup %1506  ;;  %v1124_v5 = vadd.f32 0.001, %v1091_v32  ;;  %v966_v44 = vmul.f32 0.6931472, %v1505_v20  ;;  %1520 = vpow2.f32 %v936_v56  ;;  %vm1016_vm9 = vcmp.lt.f32.partialorder %v1015_v61, 0.0004427343 }
 0x2c0   : > { %v1123_v7 = vadd.f32 0.001, %v1090_v37  ;;  %v981_v47 = vsel %vm1821_vm5, %v978_v14, %v975_v48 }
 0x2c1   : > { %v1509_v0 = vpop.eup %1508  ;;  %v1140_v1 = vsel %vm1106_vm4, %v1771_v58, %v1124_v5  ;;  %v1093_v4 = vadd.f32 %v981_v47, %v869_v52  ;;  %v972_v59 = vsel %vm1832_vm6, %v969_v27, %v966_v44  ;;  %v987_v58 = vmul.f32 %v1805_v30, %v986_v39 }
 0x2c2   : > { %v1511_v13 = vpop.eup %1510  ;;  %1156 = vst.msk [vmem:[%s1862_s12 + $0x8] sm:$0xff] %vm229_vm0, %v1140_v1  ;;  %v1139_v25 = vsel %vm1106_vm4, %v1787_v11, %v1123_v7  ;;  %v1092_v45 = vadd.f32 %v972_v59, %v868_v53  ;;  %v993_v14 = vmul.f32 0.6931472, %v1509_v0  ;;  %v1900_v53 = vadd.f32 %v1785_v10, %v1723_v3 }
 0x2c3   : > { %1155 = vst.msk [vmem:[%s1862_s12] sm:$0xff] %vm229_vm0, %v1139_v25  ;;  %v1126_v12 = vadd.f32 0.001, %v1093_v4  ;;  %v984_v52 = vmul.f32 0.6931472, %v1511_v13  ;;  %v1890_v16 = vpop.eup %1512  ;;  %v872_v44 = vmax.f32 %v1754_v36, 0.0  ;;  %v1968_v1 = vadd.f32 %v1811_v34, %v1723_v3 }
 0x2c4   : > { %v1125_v21 = vadd.f32 0.001, %v1092_v45  ;;  %v999_v11 = vsel %vm1843_vm7, %v996_v50, %v993_v14  ;;  %v1000_v31 = vadd.f32 1.0, %v1890_v16  ;;  %v895_v26 = vand.u32 2147483647, %v1900_v53 }
 0x2c5   : > { %v1515_v57 = vpop.eup %1514  ;;  %v1142_v30 = vsel %vm1106_vm4, %v1792_v19, %v1126_v12  ;;  %v1095_v28 = vadd.f32 %v999_v11, %v871_v60  ;;  %v990_v29 = vsel %vm1865_vm8, %v987_v58, %v984_v52  ;;  %v1003_v20 = vmul.f32 -0.5, %v1890_v16 }
 0x2c6   : > { %v1910_v63 = vpop.eup %1516  ;;  %1158 = vst.msk [vmem:[%s1862_s12 + $0x18] sm:$0xff] %vm229_vm0, %v1142_v30  ;;  %v1141_v62 = vsel %vm1106_vm4, %v1813_v35, %v1125_v21  ;;  %v1094_v10 = vadd.f32 %v990_v29, %v870_v8  ;;  %v1011_v19 = vmul.f32 0.6931472, %v1515_v57  ;;  %1522 = vlog2.f32 %v1000_v31 }
 0x2c7   : > { %1157 = vst.msk [vmem:[%s1862_s12 + $0x10] sm:$0xff] %vm229_vm0, %v1141_v62  ;;  %v1128_v60 = vadd.f32 0.001, %v1095_v28  ;;  %v1027_v24 = vadd.f32 1.0, %v1910_v63  ;;  %v1923_v32 = vpop.eup %1518  ;;  %v892_v35 = vand.u32 2147483647, %v1896_v15 }
 0x2c8   : > { %v1127_v23 = vadd.f32 0.001, %v1094_v10  ;;  %v1017_v39 = vsel %vm1016_vm9, %v1014_v22, %v1011_v19  ;;  %v1018_v33 = vadd.f32 1.0, %v1923_v32  ;;  %v1006_v48 = vand.u32 2147483647, %v1890_v16 }
 0x2c9   : > { %v1144_v8 = vsel %vm1106_vm4, %v1819_v42, %v1128_v60  ;;  %v1097_v54 = vadd.f32 %v1017_v39, %v873_v9  ;;  %1524 = vlog2.f32 %v1027_v24  ;;  %v1030_v42 = vmul.f32 -0.5, %v1910_v63  ;;  %v1943_v9 = vpop.eup %1520 }
 0x2ca   : > { %1160 = vst.msk [vmem:[%s1862_s12 + $0x28] sm:$0xff] %vm229_vm0, %v1144_v8  ;;  %v1143_v40 = vsel %vm1106_vm4, %v1838_v17, %v1127_v23  ;;  %1526 = vtanh.f32 %v1754_v36  ;;  %v908_v51 = vsub.f32 0.0, %v892_v35  ;;  %v911_v17 = vsub.f32 0.0, %v895_v26 }
 0x2cb   : > { %1159 = vst.msk [vmem:[%s1862_s12 + $0x20] sm:$0xff] %vm229_vm0, %v1143_v40  ;;  %v1130_v37 = vadd.f32 0.001, %v1097_v54  ;;  %1528 = vtanh.f32 %v1766_v49  ;;  %v875_v27 = vmax.f32 %v1766_v49, 0.0  ;;  %v1004_v38 = vadd.f32 1.0, %v1003_v20 }
 0x2cc   : > { %1530 = vlog2.f32 %v1018_v33  ;;  %v874_v7 = vmax.f32 %v1778_v2, 0.0  ;;  %v1045_v47 = vadd.f32 1.0, %v1943_v9  ;;  %v934_v50 = vmul.f32 1.442695, %v908_v51 }
 0x2cd   : > { %v1146_v5 = vsel %vm1106_vm4, %v1855_v46, %v1130_v37  ;;  %v1031_v56 = vadd.f32 1.0, %v1030_v42  ;;  %1532 = vtanh.f32 %v1778_v2  ;;  %v940_v0 = vmul.f32 1.442695, %v911_v17 }
 0x2ce   : > { %1162 = vst.msk [vmem:[%s1862_s12 + $0x38] sm:$0xff] %vm229_vm0, %v1146_v5  ;;  %v1959_v46 = vadd.f32 %v1790_v18, %v1723_v3  ;;  %vm1961_vm10 = vcmp.lt.f32.partialorder %v1006_v48, 0.0004427343  ;;  %v1021_v49 = vmul.f32 -0.5, %v1923_v32  ;;  %1534 = vlog2.f32 %v1045_v47 }
 0x2cf   : > { %v1033_v59 = vand.u32 2147483647, %v1910_v63  ;;  %1536 = vpow2.f32 %v934_v50  ;;  %v1974_v18 = vadd.f32 %v1817_v41, %v1723_v3  ;;  %v1005_v13 = vmul.f32 %v1890_v16, %v1004_v38 }
 0x2d0   : > { %v1523_v4 = vpop.eup %1522  ;;  %v894_v2 = vand.u32 2147483647, %v1959_v46  ;;  %v1048_v25 = vmul.f32 -0.5, %v1943_v9  ;;  %1538 = vpow2.f32 %v940_v0  ;;  %v1032_v34 = vmul.f32 %v1910_v63, %v1031_v56 }
 0x2d1   : > { %v1002_v6 = vmul.f32 0.6931472, %v1523_v4  ;;  %v1024_v14 = vand.u32 2147483647, %v1923_v32  ;;  %v897_v52 = vand.u32 2147483647, %v1968_v1  ;;  %1540 = vtanh.f32 %v1830_v55 }
 0x2d2   : > { %v910_v12 = vsub.f32 0.0, %v894_v2  ;;  %v1022_v3 = vadd.f32 1.0, %v1021_v49  ;;  %v896_v41 = vand.u32 2147483647, %v1974_v18  ;;  %vm1034_vm11 = vcmp.lt.f32.partialorder %v1033_v59, 0.0004427343 }
 0x2d3   : > { %v1525_v45 = vpop.eup %1524  ;;  %v1008_v58 = vsel %vm1961_vm10, %v1005_v13, %v1002_v6  ;;  %v913_v57 = vsub.f32 0.0, %v897_v52  ;;  %v1049_v29 = vadd.f32 1.0, %v1048_v25  ;;  %v1051_v24 = vand.u32 2147483647, %v1943_v9 }
 0x2d4   : > { %v1029_v61 = vmul.f32 0.6931472, %v1525_v45  ;;  %v1527_v21 = vpop.eup %1526  ;;  %v1096_v16 = vadd.f32 %v1008_v58, %v872_v44  ;;  %v938_v11 = vmul.f32 1.442695, %v910_v12  ;;  %v912_v31 = vsub.f32 0.0, %v896_v41 }
 0x2d5   : > { %v1529_v30 = vpop.eup %1528  ;;  %v944_v19 = vmul.f32 1.442695, %v913_v57  ;;  %v1023_v60 = vmul.f32 %v1923_v32, %v1022_v3  ;;  %vm1025_vm12 = vcmp.lt.f32.partialorder %v1024_v14, 0.0004427343  ;;  %v1050_v42 = vmul.f32 %v1943_v9, %v1049_v29 }
 0x2d6   : > { %v1035_v28 = vsel %vm1034_vm11, %v1032_v34, %v1029_v61  ;;  %v1531_v63 = vpop.eup %1530  ;;  %v1129_v62 = vadd.f32 0.001, %v1096_v16  ;;  %1542 = vpow2.f32 %v938_v11  ;;  %v942_v23 = vmul.f32 1.442695, %v912_v31 }
 0x2d7   : > { %v1099_v10 = vadd.f32 %v1035_v28, %v875_v27  ;;  %v1020_v22 = vmul.f32 0.6931472, %v1531_v63  ;;  %v1533_v39 = vpop.eup %1532  ;;  %1544 = vpow2.f32 %v944_v19  ;;  %v877_v48 = vmax.f32 %v1830_v55, 0.0 }
 0x2d8   : > { %v1145_v35 = vsel %vm1106_vm4, %v1527_v21, %v1129_v62  ;;  %v1535_v8 = vpop.eup %1534  ;;  %1546 = vpow2.f32 %v942_v23  ;;  %vm1052_vm13 = vcmp.lt.f32.partialorder %v1051_v24, 0.0004427343  ;;  %v876_v14 = vmax.f32 %v1896_v15, 0.0 }
 0x2d9   : > { %v1132_v26 = vadd.f32 0.001, %v1099_v10  ;;  %1161 = vst.msk [vmem:[%s1862_s12 + $0x30] sm:$0xff] %vm229_vm0, %v1145_v35  ;;  %v1026_v54 = vsel %vm1025_vm12, %v1023_v60, %v1020_v22  ;;  %v1537_v40 = vpop.eup %1536  ;;  %v1047_v37 = vmul.f32 0.6931472, %v1535_v8  ;;  %v879_v61 = vmax.f32 %v1900_v53, 0.0 }
 0x2da   : > { %v1098_v20 = vadd.f32 %v1026_v54, %v874_v7  ;;  %v1539_v33 = vpop.eup %1538  ;;  %v1036_v51 = vadd.f32 1.0, %v1537_v40  ;;  %v1039_v50 = vmul.f32 -0.5, %v1537_v40  ;;  %v1042_v6 = vand.u32 2147483647, %v1537_v40 }
 0x2db   : > { %v1148_v32 = vsel %vm1106_vm4, %v1529_v30, %v1132_v26  ;;  %v1053_v5 = vsel %vm1052_vm13, %v1050_v42, %v1047_v37  ;;  %v1063_v44 = vadd.f32 1.0, %v1539_v33  ;;  %v1541_v7 = vpop.eup %1540  ;;  %v1066_v56 = vmul.f32 -0.5, %v1539_v33 }
 0x2dc   : > { %1164 = vst.msk [vmem:[%s1862_s12 + $0x48] sm:$0xff] %vm229_vm0, %v1148_v32  ;;  %v1131_v17 = vadd.f32 0.001, %v1098_v20  ;;  %v1101_v27 = vadd.f32 %v1053_v5, %v877_v48  ;;  %1548 = vlog2.f32 %v1036_v51  ;;  %v1040_v59 = vadd.f32 1.0, %v1039_v50 }
 0x2dd   : > { %1550 = vlog2.f32 %v1063_v44  ;;  %v1067_v13 = vadd.f32 1.0, %v1066_v56  ;;  %v1069_v25 = vand.u32 2147483647, %v1539_v33  ;;  %vm1043_vm14 = vcmp.lt.f32.partialorder %v1042_v6, 0.0004427343 }
 0x2de   : > { %v1147_v38 = vsel %vm1106_vm4, %v1533_v39, %v1131_v17  ;;  %v1134_v9 = vadd.f32 0.001, %v1101_v27  ;;  %1552 = vtanh.f32 %v1896_v15  ;;  %v1041_v58 = vmul.f32 %v1537_v40, %v1040_v59 }
 0x2df   : > { %1163 = vst.msk [vmem:[%s1862_s12 + $0x40] sm:$0xff] %vm229_vm0, %v1147_v38  ;;  %v1068_v21 = vmul.f32 %v1539_v33, %v1067_v13  ;;  %vm1070_vm15 = vcmp.lt.f32.partialorder %v1069_v25, 0.0004427343  ;;  %v878_v8 = vmax.f32 %v1959_v46, 0.0  ;;  %v881_v54 = vmax.f32 %v1968_v1, 0.0 }
 0x2e0   : > { %v1543_v47 = vpop.eup %1542  ;;  %v1150_v55 = vsel %vm1106_vm4, %v1541_v7, %v1134_v9 }
 0x2e1   : > { %v1054_v0 = vadd.f32 1.0, %v1543_v47  ;;  %v1545_v36 = vpop.eup %1544  ;;  %1166 = vst.msk [vmem:[%s1862_s12 + $0x58] sm:$0xff] %vm229_vm0, %v1150_v55  ;;  %v1057_v45 = vmul.f32 -0.5, %v1543_v47  ;;  %v1060_v29 = vand.u32 2147483647, %v1543_v47 }
 0x2e2   : > { %v1547_v49 = vpop.eup %1546  ;;  %v1081_v4 = vadd.f32 1.0, %v1545_v36  ;;  %v1084_v3 = vmul.f32 -0.5, %v1545_v36  ;;  %v1087_v10 = vand.u32 2147483647, %v1545_v36 }
 0x2e3   : > { %1554 = vlog2.f32 %v1054_v0  ;;  %v1072_v2 = vadd.f32 1.0, %v1547_v49  ;;  %v1075_v16 = vmul.f32 -0.5, %v1547_v49  ;;  %v1058_v57 = vadd.f32 1.0, %v1057_v45 }
 0x2e4   : > { %1556 = vtanh.f32 %v1900_v53  ;;  %v1085_v63 = vadd.f32 1.0, %v1084_v3  ;;  %v1078_v39 = vand.u32 2147483647, %v1547_v49  ;;  %vm1061_vm1 = vcmp.lt.f32.partialorder %v1060_v29, 0.0004427343 }
 0x2e5   : > { %1558 = vlog2.f32 %v1081_v4  ;;  %v1076_v19 = vadd.f32 1.0, %v1075_v16  ;;  %v1059_v23 = vmul.f32 %v1543_v47, %v1058_v57  ;;  %vm1088_vm2 = vcmp.lt.f32.partialorder %v1087_v10, 0.0004427343 }
 0x2e6   : > { %1560 = vlog2.f32 %v1072_v2  ;;  %v1549_v34 = vpop.eup %1548  ;;  %v1086_v42 = vmul.f32 %v1545_v36, %v1085_v63  ;;  %vm1079_vm3 = vcmp.lt.f32.partialorder %v1078_v39, 0.0004427343 }
 0x2e7   : > { %v1551_v12 = vpop.eup %1550  ;;  %v1038_v52 = vmul.f32 0.6931472, %v1549_v34  ;;  %1562 = vtanh.f32 %v1959_v46  ;;  %v1077_v51 = vmul.f32 %v1547_v49, %v1076_v19 }
 0x2e8   : > { %v1065_v41 = vmul.f32 0.6931472, %v1551_v12  ;;  %v1553_v31 = vpop.eup %1552  ;;  %1564 = vtanh.f32 %v1968_v1  ;;  %v880_v1 = vmax.f32 %v1974_v18, 0.0 }
 0x2e9   : > { %v1044_v11 = vsel %vm1043_vm14, %v1041_v58, %v1038_v52  ;;  %1566 = vtanh.f32 %v1974_v18 }
 0x2ea   : > { %v1100_v30 = vadd.f32 %v1044_v11, %v876_v14  ;;  %v1071_v28 = vsel %vm1070_vm15, %v1068_v21, %v1065_v41 }
 0x2eb   : > { %v1103_v15 = vadd.f32 %v1071_v28, %v879_v61 }
 0x2ec   : > { %v1133_v53 = vadd.f32 0.001, %v1100_v30 }
 0x2ed   : > { %v1555_v62 = vpop.eup %1554  ;;  %v1136_v60 = vadd.f32 0.001, %v1103_v15 }
 0x2ee   : > { %v1557_v22 = vpop.eup %1556  ;;  %v1056_v24 = vmul.f32 0.6931472, %v1555_v62  ;;  %v1149_v26 = vsel %vm1106_vm4, %v1553_v31, %v1133_v53 }
 0x2ef   : > { %v1559_v35 = vpop.eup %1558  ;;  %1165 = vst.msk [vmem:[%s1862_s12 + $0x50] sm:$0xff] %vm229_vm0, %v1149_v26  ;;  %v1152_v32 = vsel %vm1106_vm4, %v1557_v22, %v1136_v60 }
 0x2f0   : > { %v1561_v40 = vpop.eup %1560  ;;  %v1062_v20 = vsel %vm1061_vm1, %v1059_v23, %v1056_v24  ;;  %v1083_v37 = vmul.f32 0.6931472, %v1559_v35  ;;  %1168 = vst.msk [vmem:[%s1862_s12 + $0x68] sm:$0xff] %vm229_vm0, %v1152_v32 }
 0x2f1   : > { %v1102_v33 = vadd.f32 %v1062_v20, %v878_v8  ;;  %v1074_v48 = vmul.f32 0.6931472, %v1561_v40  ;;  %v1563_v27 = vpop.eup %1562 }
 0x2f2   : > { %v1089_v46 = vsel %vm1088_vm2, %v1086_v42, %v1083_v37  ;;  %v1565_v47 = vpop.eup %1564 }
 0x2f3   : > { %v1135_v17 = vadd.f32 0.001, %v1102_v33  ;;  %v1105_v5 = vadd.f32 %v1089_v46, %v881_v54  ;;  %v1080_v44 = vsel %vm1079_vm3, %v1077_v51, %v1074_v48  ;;  %v1567_v55 = vpop.eup %1566 }
 0x2f4   : > { %v1104_v38 = vadd.f32 %v1080_v44, %v880_v1 }
 0x2f5   : > { %v1151_v7 = vsel %vm1106_vm4, %v1563_v27, %v1135_v17  ;;  %v1138_v9 = vadd.f32 0.001, %v1105_v5 }
 0x2f6   : > { %1167 = vst.msk [vmem:[%s1862_s12 + $0x60] sm:$0xff] %vm229_vm0, %v1151_v7  ;;  %v1137_v50 = vadd.f32 0.001, %v1104_v38 }
 0x2f7   : > { %v1154_v56 = vsel %vm1106_vm4, %v1565_v47, %v1138_v9 }
 0x2f8   : > { %1170 = vst.msk [vmem:[%s1862_s12 + $0x78] sm:$0xff] %vm229_vm0, %v1154_v56  ;;  %v1153_v18 = vsel %vm1106_vm4, %v1567_v55, %v1137_v50 }
 0x2f9   : > { %1169 = vst.msk [vmem:[%s1862_s12 + $0x70] sm:$0xff] %vm229_vm0, %v1153_v18 }
 0x2fa PF: > { %s14_s15 = sadd.s32 1, %s1574_s15  }
 0x2fb   : > { %p11_p4 = scmp.ge.s32.totalorder %s14_s15, 4  }
 0x2fd   :  { %13 = sbr.rel (!%p11_p4) target bundleno = 1 (0x1), region = 66 }

</bundles_post_ra>
